<compile_context>
chip_gen: v7x
topology: tpu7x:2x2x1
jax: 0.10.0
libtpu: 0.0.40
codegen_flags: <defaults>
</compile_context>

<pallas_src>
import functools

import jax
import jax.numpy as jnp
from jax.experimental import pallas as pl
from jax.experimental.pallas import tpu as pltpu


def linear_kernel(x_ref, w_ref, b_ref, o_ref):
    """x_ref: (F_in, TB) VMEM; w_ref: (F_in,) SMEM; b_ref: (1,) SMEM; o_ref: (1, TB) VMEM."""
    f_in = x_ref.shape[0]
    # Unrolled VPU FMAs: acc[0, :] = sum_f w[f] * x[f, :]   (scalar * lane-vector)
    acc = x_ref[0:1, :] * w_ref[0]
    for f in range(1, f_in):
        acc = acc + x_ref[f:f + 1, :] * w_ref[f]
    o_ref[...] = (acc + b_ref[0]).astype(o_ref.dtype)


@functools.partial(jax.jit, static_argnames=("tb_max",))
def net_forward(x, weight, bias, *, tb_max=2048):
    """x: (B, F_in) f32; weight: (F_out, F_in) f32 (PyTorch layout); bias: (F_out,) f32.

    Returns (B, F_out) f32, matching nn.Linear: x @ weight.T + bias.
    """
    B, F_in = x.shape
    F_out = weight.shape[0]
    assert F_out == 1, "Net spec is Linear(3, 1)"

    lane = 128
    # Lane-dense tile: a multiple of 128, no larger than needed, capped at tb_max.
    tb = min(tb_max, ((B + lane - 1) // lane) * lane)
    num_tiles = pl.cdiv(B, tb)
    b_pad = num_tiles * tb

    # Wrapper-side glue (layout plumbing, not compute):
    #   batch onto lanes, features onto sublanes, pad batch to a tile multiple.
    x_t = jnp.pad(jnp.transpose(x.astype(jnp.float32)),
                  ((0, 0), (0, b_pad - B)))                    # (F_in, b_pad)
    w_flat = weight.reshape(F_in).astype(jnp.float32)          # (F_in,)
    b_flat = bias.reshape(F_out).astype(jnp.float32)           # (F_out,)

    out_t = pl.pallas_call(
        linear_kernel,
        out_shape=jax.ShapeDtypeStruct((F_out, b_pad), jnp.float32),
        grid_spec=pltpu.PrefetchScalarGridSpec(
            num_scalar_prefetch=0,
            grid=(num_tiles,),
            in_specs=[
                # (F_in, tb): second-to-last dim equals the full array dim (3),
                # last dim is a multiple of 128 -> valid, lane-dense tiling.
                pl.BlockSpec((F_in, tb), lambda i: (0, i)),
                # 4 scalars of parameters sit in SMEM (no VMEM double-buffering).
                pl.BlockSpec(memory_space=pltpu.MemorySpace.SMEM),
                pl.BlockSpec(memory_space=pltpu.MemorySpace.SMEM),
            ],
            out_specs=pl.BlockSpec((F_out, tb), lambda i: (0, i)),
        ),
        compiler_params=pltpu.CompilerParams(
            # Batch tiles are independent -> shard across v7x's two TensorCores.
            dimension_semantics=("parallel",),
        ),
    )(x_t, w_flat, b_flat)

    # Strip batch padding and restore (B, F_out) layout.
    return jnp.transpose(out_t[:, :B])


if __name__ == "__main__":
    key = jax.random.PRNGKey(0)
    kx, kw, kb = jax.random.split(key, 3)

    B, F_in, F_out = 8, 3, 1

    # Deterministic parameter init, same shapes as nn.Linear(3, 1).
    # PyTorch default init is U(-1/sqrt(fan_in), 1/sqrt(fan_in)); mimic the range.
    bound = 1.0 / jnp.sqrt(jnp.float32(F_in))
    weight = jax.random.uniform(kw, (F_out, F_in), jnp.float32, -bound, bound)
    bias = jax.random.uniform(kb, (F_out,), jnp.float32, -bound, bound)

    x = jax.random.normal(kx, (B, F_in), jnp.float32)

    out = net_forward(x, weight, bias)
    out = jax.block_until_ready(out)

    # Reference check against plain JAX (same math as torch.nn.Linear).
    ref = x @ weight.T + bias
    assert out.shape == (B, F_out)
    assert jnp.allclose(out, ref, atol=1e-5, rtol=1e-5)

    print("KERNEL_OK")
</pallas_src>

<mosaic_0001>
module attributes {stable_mosaic.version = 11 : i64} {
  func.func @linear_kernel(%arg0: i32, %arg1: memref<3x128xf32, #tpu.memory_space<vmem>>, %arg2: memref<3xf32, #tpu.memory_space<smem>>, %arg3: memref<1xf32, #tpu.memory_space<smem>>, %arg4: memref<1x128xf32, #tpu.memory_space<vmem>>) attributes {dimension_semantics = [#tpu.dimension_semantics<parallel>], iteration_bounds = array<i64: 1>, scalar_prefetch = 0 : i64, scratch_operands = 0 : i64, tpu.core_type = #tpu.core_type<tc>, window_params = [{transform_indices = @transform_0, window_bounds = array<i64: 3, 128>}, {transform_indices = @transform_1, window_bounds = array<i64: 3>}, {transform_indices = @transform_2, window_bounds = array<i64: 1>}, {transform_indices = @transform_3, window_bounds = array<i64: 1, 128>}]} {
    %c0 = arith.constant 0 : index
    %c0_0 = arith.constant 0 : index
    %0 = vector.load %arg1[%c0, %c0_0] : memref<3x128xf32, #tpu.memory_space<vmem>>, vector<1x128xf32>
    %c0_1 = arith.constant 0 : index
    %1 = memref.load %arg2[%c0_1] : memref<3xf32, #tpu.memory_space<smem>>
    %2 = vector.broadcast %1 : f32 to vector<1x128xf32>
    %3 = arith.mulf %0, %2 : vector<1x128xf32>
    %c1 = arith.constant 1 : index
    %c0_2 = arith.constant 0 : index
    %4 = vector.load %arg1[%c1, %c0_2] : memref<3x128xf32, #tpu.memory_space<vmem>>, vector<1x128xf32>
    %c1_3 = arith.constant 1 : index
    %5 = memref.load %arg2[%c1_3] : memref<3xf32, #tpu.memory_space<smem>>
    %6 = vector.broadcast %5 : f32 to vector<1x128xf32>
    %7 = arith.mulf %4, %6 : vector<1x128xf32>
    %8 = arith.addf %3, %7 : vector<1x128xf32>
    %c2 = arith.constant 2 : index
    %c0_4 = arith.constant 0 : index
    %9 = vector.load %arg1[%c2, %c0_4] : memref<3x128xf32, #tpu.memory_space<vmem>>, vector<1x128xf32>
    %c2_5 = arith.constant 2 : index
    %10 = memref.load %arg2[%c2_5] : memref<3xf32, #tpu.memory_space<smem>>
    %11 = vector.broadcast %10 : f32 to vector<1x128xf32>
    %12 = arith.mulf %9, %11 : vector<1x128xf32>
    %13 = arith.addf %8, %12 : vector<1x128xf32>
    %c0_6 = arith.constant 0 : index
    %14 = memref.load %arg3[%c0_6] : memref<1xf32, #tpu.memory_space<smem>>
    %15 = vector.broadcast %14 : f32 to vector<1x128xf32>
    %16 = arith.addf %13, %15 : vector<1x128xf32>
    %c0_7 = arith.constant 0 : index
    %c0_8 = arith.constant 0 : index
    %17 = vector.load %arg4[%c0_7, %c0_8] : memref<1x128xf32, #tpu.memory_space<vmem>>, vector<1x128xf32>
    tpu.vector_store %arg4[%c0_7, %c0_8], %16 {strides = array<i32>} : memref<1x128xf32, #tpu.memory_space<vmem>>, vector<1x128xf32>,
    return
  }
  func.func @transform_0(%arg0: i32) -> (i32, i32) {
    %c0_i32 = arith.constant 0 : i32
    %c0_i32_0 = arith.constant 0 : i32
    return %c0_i32, %arg0 : i32, i32
  }
  func.func @transform_1(%arg0: i32) -> i32 {
    %c0_i32 = arith.constant 0 : i32
    %c0_i32_0 = arith.constant 0 : i32
    return %c0_i32 : i32
  }
  func.func @transform_2(%arg0: i32) -> i32 {
    %c0_i32 = arith.constant 0 : i32
    %c0_i32_0 = arith.constant 0 : i32
    return %c0_i32 : i32
  }
  func.func @transform_3(%arg0: i32) -> (i32, i32) {
    %c0_i32 = arith.constant 0 : i32
    %c0_i32_0 = arith.constant 0 : i32
    return %c0_i32, %arg0 : i32, i32
  }
}

</mosaic_0001>

<bundles_post_ra>
// kernel: net_forward.1
= control target key start
LH: loop header
LB: loop body
LE: loop exit
PB: predicated region body
PF: predicated region fallthrough
CT: control target
= control target key end

     0   :  { %9 = vsyncpa [#allocation4], 0  ;;  %s107_s0 = inlined_call_operand.vmem [shape: f32[3,128], index: 0, kind: input, shape index: {}]   ;;  %s108_s1 = inlined_call_operand.vmem [shape: f32[3], index: 1, kind: input, shape index: {}]   ;;  %s109_s2 = inlined_call_operand.<no memory space> [shape: f32[1], index: 2, kind: input, shape index: {}]   ;;  %s110_s3 = inlined_call_operand.vmem [shape: f32[1,128], index: 3, kind: output, shape index: {}]  }
   0x1   :  { %s18_s14 = sshll.u32 %s108_s1, 4  ;;  %s19_s14 = int_to_ptr.vmem [resolvable:$true] %s18_s14 }
   0x2   :  { %s54_s15 = scalar_lea.vmem %s19_s14, 16  ;;  %p59_p1 = scmp.lt.s32.totalorder %s19_s14, %s19_s14 }
   0x3   :  { %p55_p0 = scmp.ne.s32.totalorder %s19_s14, %s54_s15  ;;  %p60_p2 = scmp.lt.s32.totalorder %s54_s15, %s54_s15 }
   0x5   :  { %p61_p3 = por %p60_p2, %p59_p1 }
   0x7   :  { %p62_p4 = pnand %p61_p3, %p55_p0 }
   0x9   :  { %65 = shalt.err (!%p62_p4)
}
   0xa   :  { %s68_s16 = smov [#allocation3]  }
   0xb   :  { %21 = dma.vmem_to_smem %s19_s14, 16, %s68_s16, [#allocation4]  }
   0xc   :  { %66 = dma.done.wait [#allocation4], 16  }
   0xd   :  { %67 = vsyncadd [#allocation4], 4294967280 }
   0xe   :  { %27 = sfence }
   0xf   :  { %s29_s17 = sld [smem:[#allocation3]]  ;;  %s51_s18 = sld [smem:[#allocation3 + $0x1]]  ;;  %v28_v0 = vld [vmem:[%s107_s0] sm:$0x1]  ;;  %v32_v1 = vld [vmem:[%s107_s0 + $0x1] sm:$0x1]  ;;  %v43_v10 = vstv %s109_s2 }
  0x10   :  { %s52_s19 = sld [smem:[#allocation3 + $0x2]]  ;;  %v37_v2 = vld [vmem:[%s107_s0 + $0x2] sm:$0x1] }
  0x15   :  { %v30_v3 = vstv %s29_s17  ;;  %v34_v5 = vstv %s51_s18 }
  0x16   :  { %v31_v4 = vmul.f32 %v30_v3, %v28_v0  ;;  %v39_v6 = vstv %s52_s19  ;;  %v35_v7 = vmul.f32 %v34_v5, %v32_v1 }
  0x17   :  { %v40_v8 = vmul.f32 %v39_v6, %v37_v2 }
  0x18   :  { %v36_v9 = vadd.f32 %v35_v7, %v31_v4 }
  0x1a   :  { %v41_v11 = vadd.f32 %v40_v8, %v36_v9 }
  0x1c   :  { %v44_v12 = vadd.f32 %v43_v10, %v41_v11 }
  0x1e   :  { %45 = vst [vmem:[%s110_s3] sm:$0x1] %v44_v12 }
  0x1f   :  { %50 = vsyncpa [#allocation4], 1 }

</bundles_post_ra>
